<compile_context>
chip_gen: v5e
topology: v5e:2x2
jax: 0.10.0
libtpu: 0.0.40
codegen_flags: <defaults>
</compile_context>

<pallas_src>
import functools

import jax
import jax.numpy as jnp
from jax.experimental import pallas as pl
from jax.experimental.pallas import tpu as pltpu


def _round_up(x, m):
    return ((x + m - 1) // m) * m


def sampler3_kernel(x_ref, w1_ref, w2_ref, w3_ref, o_ref):
    # Layer 1: Linear(10F -> 40F, no bias); f32 accumulation on the MXU.
    h = jnp.dot(x_ref[...], w1_ref[...], preferred_element_type=jnp.float32)
    h = jnp.where(h > 0, h, 0.1 * h)          # LeakyReLU(negative_slope=0.1)
    # Layer 2: Linear(40F -> 20F, no bias).
    h = jnp.dot(h, w2_ref[...], preferred_element_type=jnp.float32)
    h = jnp.where(h > 0, h, 0.1 * h)          # LeakyReLU(negative_slope=0.1)
    # Layer 3: Linear(20F -> 10F, no bias); no activation after the last layer.
    out = jnp.dot(h, w3_ref[...], preferred_element_type=jnp.float32)
    o_ref[...] = out.astype(o_ref.dtype)


def prepare_sampler3_params(w1, w2, w3):
    """One-time weight prep (do this OUTSIDE the per-call forward).

    PyTorch nn.Linear weights are (out_features, in_features); transpose to
    (in, out) so the kernel is a plain x @ W, and zero-pad every feature dim up
    to a multiple of 128 so all vector loads/stores are lane-dense and the MXU
    tiles are better filled. Zero padding is exact: padded weight rows/cols are
    zero and LeakyReLU(0) == 0, so padded lanes stay zero end-to-end.
    """
    def prep(w):
        out_f, in_f = w.shape
        in_p, out_p = _round_up(in_f, 128), _round_up(out_f, 128)
        wt = w.T  # (in, out)
        return jnp.pad(wt, ((0, in_p - in_f), (0, out_p - out_f)))

    return prep(w1), prep(w2), prep(w3)


def sampler3_forward(x, w1_p, w2_p, w3_p, *, d_out=None, tb=512):
    """x: (B, 10F) f32. w*_p: padded/transposed weights from prepare_sampler3_params."""
    B, d_in = x.shape
    d_in_p, d_h1_p = w1_p.shape
    d_h1_p2, d_h2_p = w2_p.shape
    d_h2_p2, d_out_p = w3_p.shape
    assert d_h1_p == d_h1_p2 and d_h2_p == d_h2_p2
    if d_out is None:
        d_out = d_in  # Sampler3 maps 10F -> 10F

    # Batch tile: large multiple of 8 (f32 sublane), bounded so double-buffered
    # tiles + resident weights stay comfortably inside VMEM on all chips.
    tb = max(8, min(tb, _round_up(B, 8)))
    tb = _round_up(tb, 8)
    B_p = _round_up(B, tb)
    grid = (B_p // tb,)

    # Pad batch to a tile multiple and features to the padded lane width.
    x_p = jnp.pad(x, ((0, B_p - B), (0, d_in_p - d_in)))

    # Advisory cost estimate so XLA can overlap neighbours with this kernel.
    flops = 2 * B_p * (d_in_p * d_h1_p + d_h1_p * d_h2_p + d_h2_p * d_out_p)
    bytes_accessed = 4 * (B_p * d_in_p + B_p * d_out_p
                          + w1_p.size + w2_p.size + w3_p.size)

    # Explicit VMEM budget: 2x-buffered x/out tiles + weights + intermediate h,
    # with headroom; clamped to stay under every chip's physical VMEM.
    tile_bytes = 4 * (2 * tb * d_in_p + 2 * tb * d_out_p
                      + 2 * (w1_p.size + w2_p.size + w3_p.size)
                      + tb * max(d_h1_p, d_h2_p))
    vmem_limit = int(min(48 << 20, max(16 << 20, 2 * tile_bytes)))

    out_p = pl.pallas_call(
        sampler3_kernel,
        out_shape=jax.ShapeDtypeStruct((B_p, d_out_p), x.dtype),
        grid=grid,
        in_specs=[
            pl.BlockSpec((tb, d_in_p), lambda i: (i, 0)),       # x tile (pipelined)
            pl.BlockSpec((d_in_p, d_h1_p), lambda i: (0, 0)),   # W1 (resident)
            pl.BlockSpec((d_h1_p, d_h2_p), lambda i: (0, 0)),   # W2 (resident)
            pl.BlockSpec((d_h2_p, d_out_p), lambda i: (0, 0)),  # W3 (resident)
        ],
        out_specs=pl.BlockSpec((tb, d_out_p), lambda i: (i, 0)),
        compiler_params=pltpu.CompilerParams(
            dimension_semantics=("parallel",),
            vmem_limit_bytes=vmem_limit,
        ),
        cost_estimate=pl.CostEstimate(
            flops=flops, transcendentals=0, bytes_accessed=bytes_accessed),
    )(x_p, w1_p, w2_p, w3_p)

    # Slice padded batch rows / feature lanes back off.
    return out_p[:B, :d_out]


def sampler3_reference(x, w1, w2, w3):
    dot = functools.partial(jnp.dot, precision=jax.lax.Precision.HIGHEST)
    h = dot(x, w1.T)
    h = jnp.where(h > 0, h, 0.1 * h)
    h = dot(h, w2.T)
    h = jnp.where(h > 0, h, 0.1 * h)
    return dot(h, w3.T)


if __name__ == "__main__":
    feature_maps = 4
    batch = 8
    d_in = 10 * feature_maps    # 40
    d_h1 = 40 * feature_maps    # 160
    d_h2 = 20 * feature_maps    # 80
    d_out = 10 * feature_maps   # 40

    key = jax.random.PRNGKey(0)
    kx, k1, k2, k3 = jax.random.split(key, 4)

    x = jax.random.normal(kx, (batch, d_in), dtype=jnp.float32)
    # nn.Linear weight layout: (out_features, in_features), bias=False everywhere.
    w1 = jax.random.normal(k1, (d_h1, d_in), dtype=jnp.float32) * 0.1
    w2 = jax.random.normal(k2, (d_h2, d_h1), dtype=jnp.float32) * 0.1
    w3 = jax.random.normal(k3, (d_out, d_h2), dtype=jnp.float32) * 0.1

    # One-time prep (transpose + lane padding) — not part of the per-call path.
    w1_p, w2_p, w3_p = prepare_sampler3_params(w1, w2, w3)

    out = sampler3_forward(x, w1_p, w2_p, w3_p, d_out=d_out)
    out = jax.block_until_ready(out)

    ref = sampler3_reference(x, w1, w2, w3)
    assert out.shape == (batch, d_out)
    assert jnp.allclose(out, ref, atol=1e-5, rtol=1e-5), float(
        jnp.max(jnp.abs(out - ref)))

    print("KERNEL_OK")
</pallas_src>

<mosaic_0001>
module attributes {stable_mosaic.version = 11 : i64} {
  func.func @sampler3_kernel(%arg0: i32, %arg1: memref<8x128xf32, #tpu.memory_space<vmem>>, %arg2: memref<128x256xf32, #tpu.memory_space<vmem>>, %arg3: memref<256x128xf32, #tpu.memory_space<vmem>>, %arg4: memref<128x128xf32, #tpu.memory_space<vmem>>, %arg5: memref<8x128xf32, #tpu.memory_space<vmem>>) attributes {dimension_semantics = [#tpu.dimension_semantics<parallel>], iteration_bounds = array<i64: 1>, scalar_prefetch = 0 : i64, scratch_operands = 0 : i64, tpu.core_type = #tpu.core_type<tc>, window_params = [{transform_indices = @transform_0, window_bounds = array<i64: 8, 128>}, {pipeline_mode = #tpu.pipeline_mode<synchronous>, transform_indices = @transform_1, window_bounds = array<i64: 128, 256>}, {pipeline_mode = #tpu.pipeline_mode<synchronous>, transform_indices = @transform_2, window_bounds = array<i64: 256, 128>}, {pipeline_mode = #tpu.pipeline_mode<synchronous>, transform_indices = @transform_3, window_bounds = array<i64: 128, 128>}, {transform_indices = @transform_4, window_bounds = array<i64: 8, 128>}]} {
    %c0 = arith.constant 0 : index
    %c0_0 = arith.constant 0 : index
    %0 = vector.load %arg1[%c0, %c0_0] : memref<8x128xf32, #tpu.memory_space<vmem>>, vector<8x128xf32>
    %c0_1 = arith.constant 0 : index
    %c0_2 = arith.constant 0 : index
    %1 = vector.load %arg2[%c0_1, %c0_2] : memref<128x256xf32, #tpu.memory_space<vmem>>, vector<128x256xf32>
    %cst = arith.constant dense<0.000000e+00> : vector<8x256xf32>
    %2 = tpu.matmul %0, %1, %cst {dimension_numbers = #tpu.dot_dimension_numbers<[1], [0], [0], [1], [0, 0, 1, 1], [], []>} : vector<8x128xf32>, vector<128x256xf32>, vector<8x256xf32> -> vector<8x256xf32>
    %cst_3 = arith.constant 0.000000e+00 : f32
    %3 = vector.broadcast %cst_3 : f32 to vector<8x256xf32>
    %4 = arith.cmpf ogt, %2, %3 : vector<8x256xf32>
    %cst_4 = arith.constant 1.000000e-01 : f32
    %5 = vector.broadcast %cst_4 : f32 to vector<8x256xf32>
    %6 = arith.mulf %5, %2 : vector<8x256xf32>
    %7 = arith.select %4, %2, %6 : vector<8x256xi1>, vector<8x256xf32>
    %c0_5 = arith.constant 0 : index
    %c0_6 = arith.constant 0 : index
    %8 = vector.load %arg3[%c0_5, %c0_6] : memref<256x128xf32, #tpu.memory_space<vmem>>, vector<256x128xf32>
    %cst_7 = arith.constant dense<0.000000e+00> : vector<8x128xf32>
    %9 = tpu.matmul %7, %8, %cst_7 {dimension_numbers = #tpu.dot_dimension_numbers<[1], [0], [0], [1], [0, 0, 1, 1], [], []>} : vector<8x256xf32>, vector<256x128xf32>, vector<8x128xf32> -> vector<8x128xf32>
    %cst_8 = arith.constant 0.000000e+00 : f32
    %10 = vector.broadcast %cst_8 : f32 to vector<8x128xf32>
    %11 = arith.cmpf ogt, %9, %10 : vector<8x128xf32>
    %cst_9 = arith.constant 1.000000e-01 : f32
    %12 = vector.broadcast %cst_9 : f32 to vector<8x128xf32>
    %13 = arith.mulf %12, %9 : vector<8x128xf32>
    %14 = arith.select %11, %9, %13 : vector<8x128xi1>, vector<8x128xf32>
    %c0_10 = arith.constant 0 : index
    %c0_11 = arith.constant 0 : index
    %15 = vector.load %arg4[%c0_10, %c0_11] : memref<128x128xf32, #tpu.memory_space<vmem>>, vector<128x128xf32>
    %cst_12 = arith.constant dense<0.000000e+00> : vector<8x128xf32>
    %16 = tpu.matmul %14, %15, %cst_12 {dimension_numbers = #tpu.dot_dimension_numbers<[1], [0], [0], [1], [0, 0, 1, 1], [], []>} : vector<8x128xf32>, vector<128x128xf32>, vector<8x128xf32> -> vector<8x128xf32>
    %c0_13 = arith.constant 0 : index
    %c0_14 = arith.constant 0 : index
    %17 = vector.load %arg5[%c0_13, %c0_14] : memref<8x128xf32, #tpu.memory_space<vmem>>, vector<8x128xf32>
    tpu.vector_store %arg5[%c0_13, %c0_14], %16 {strides = array<i32>} : memref<8x128xf32, #tpu.memory_space<vmem>>, vector<8x128xf32>,
    return
  }
  func.func @transform_0(%arg0: i32) -> (i32, i32) {
    %c0_i32 = arith.constant 0 : i32
    %c0_i32_0 = arith.constant 0 : i32
    return %arg0, %c0_i32 : i32, i32
  }
  func.func @transform_1(%arg0: i32) -> (i32, i32) {
    %c0_i32 = arith.constant 0 : i32
    %c0_i32_0 = arith.constant 0 : i32
    %c0_i32_1 = arith.constant 0 : i32
    return %c0_i32, %c0_i32_0 : i32, i32
  }
  func.func @transform_2(%arg0: i32) -> (i32, i32) {
    %c0_i32 = arith.constant 0 : i32
    %c0_i32_0 = arith.constant 0 : i32
    %c0_i32_1 = arith.constant 0 : i32
    return %c0_i32, %c0_i32_0 : i32, i32
  }
  func.func @transform_3(%arg0: i32) -> (i32, i32) {
    %c0_i32 = arith.constant 0 : i32
    %c0_i32_0 = arith.constant 0 : i32
    %c0_i32_1 = arith.constant 0 : i32
    return %c0_i32, %c0_i32_0 : i32, i32
  }
  func.func @transform_4(%arg0: i32) -> (i32, i32) {
    %c0_i32 = arith.constant 0 : i32
    %c0_i32_0 = arith.constant 0 : i32
    return %arg0, %c0_i32 : i32, i32
  }
}

</mosaic_0001>

<bundles_post_ra>
// kernel: tpu_custom_call.1
= control target key start
LH: loop header
LB: loop body
LE: loop exit
PB: predicated region body
PF: predicated region fallthrough
CT: control target
= control target key end

     0   :  { %9 = vsyncpa [#allocation3], 0  ;;  %s475_s0 = inlined_call_operand.hbm [shape: f32[8,128], index: 0, kind: input, shape index: {}]   ;;  %s476_s1 = inlined_call_operand.hbm [shape: f32[128,256], index: 1, kind: input, shape index: {}]   ;;  %s477_s2 = inlined_call_operand.hbm [shape: f32[256,128], index: 2, kind: input, shape index: {}]   ;;  %s478_s3 = inlined_call_operand.hbm [shape: f32[128,128], index: 3, kind: input, shape index: {}]   ;;  %s479_s4 = inlined_call_operand.hbm [shape: f32[8,128], index: 4, kind: output, shape index: {}]  }
   0x1   :  { %10 = vsyncpa [#allocation6], 0 }
   0x2   :  { %11 = vsyncpa [#allocation9], 0  ;;  %s28_s17 = sshll.u32 %s476_s1, 4  ;;  %s29_s17 = int_to_ptr.hbm [resolvable:$true] %s28_s17 }
   0x3   :  { %12 = vsyncpa [#allocation4], 0  ;;  %s426_s18 = smov [#allocation5]   ;;  %s18_s22 = sshll.u32 %s475_s0, 4  ;;  %s19_s22 = int_to_ptr.hbm [resolvable:$true] %s18_s22 }
   0x4   :  { %s30_s19 = sshll.u32 %s426_s18, 4  ;;  %s427_s23 = smov 256   ;;  %s31_s19 = int_to_ptr.vmem [resolvable:$true] %s30_s19 }
   0x5   :  { %s428_s24 = smov 16   ;;  %s429_s25 = smov [#allocation2]  }
   0x6   :  { %36 = dma.hbm_to_vmem [thread:$0]  %s29_s17, 4096, %s31_s19, [#allocation6], %s427_s23, %s427_s23, %s428_s24  }
   0x7   :  { %s20_s26 = sshll.u32 %s429_s25, 4  ;;  %s41_s29 = sshll.u32 %s477_s2, 4  ;;  %s21_s26 = int_to_ptr.vmem [resolvable:$true] %s20_s26  ;;  %s42_s29 = int_to_ptr.hbm [resolvable:$true] %s41_s29 }
   0x8   :  { %23 = dma.hbm_to_vmem [thread:$0]  %s19_s22, 128, %s21_s26, [#allocation3]  }
   0x9   :  { %s430_s1 = smov [#allocation7]   ;;  %s54_s0 = sshll.u32 %s478_s3, 4  ;;  %s55_s0 = int_to_ptr.hbm [resolvable:$true] %s54_s0 }
   0xa   :  { %s43_s30 = sshll.u32 %s430_s1, 4  ;;  %s431_s7 = smov 128   ;;  %s44_s30 = int_to_ptr.vmem [resolvable:$true] %s43_s30 }
   0xb   :  { %s432_s8 = smov 8   ;;  %s433_s9 = smov [#allocation8]  }
   0xc   :  { %49 = dma.hbm_to_vmem [thread:$0]  %s42_s29, 4096, %s44_s30, [#allocation6], %s431_s7, %s431_s7, %s432_s8  }
   0xd   :  { %s56_s10 = sshll.u32 %s433_s9, 4  ;;  %s57_s10 = int_to_ptr.vmem [resolvable:$true] %s56_s10 }
   0xe   :  { %62 = dma.hbm_to_vmem [thread:$0]  %s55_s0, 2048, %s57_s10, [#allocation9], %s431_s7, %s431_s7, %s432_s8  }
   0xf   :  { %418 = dma.done.wait [#allocation3], 128  }
  0x10   :  { %419 = vsyncadd [#allocation3], 4294967168 }
  0x11   :  { %420 = dma.done.wait [#allocation6], 8192  }
  0x12   :  { %421 = vsyncadd [#allocation6], 4294959104 }
  0x13   :  { %422 = dma.done.wait [#allocation9], 2048  }
  0x14   :  { %423 = vsyncadd [#allocation9], 4294965248  ;;  %v110_v0 = vld [vmem:[#allocation5 + $0xf0] sm:$0xff]  ;;  %v111_v1 = vld [vmem:[#allocation5 + $0xf8] sm:$0xff]  ;;  %s434_s2 = smov [#allocation10]   ;;  %s277_s13 = sshll.u32 %s479_s4, 4  ;;  %s278_s13 = int_to_ptr.hbm [resolvable:$true] %s277_s13 }
  0x15   :  { %v108_v2 = vld [vmem:[#allocation5 + $0xe0] sm:$0xff]  ;;  %112 = vmatpush.msra.mxu0 %v110_v0  ;;  %132 = vmatpush.msra.mxu1 %v111_v1  ;;  %v109_v3 = vld [vmem:[#allocation5 + $0xe8] sm:$0xff]  ;;  %v106_v4 = vld [vmem:[#allocation5 + $0xd0] sm:$0xff]  ;;  %s275_s3 = sshll.u32 %s434_s2, 4  ;;  %s276_s3 = int_to_ptr.vmem [resolvable:$true] %s275_s3 }
  0x16   :  { %v107_v5 = vld [vmem:[#allocation5 + $0xd8] sm:$0xff]  ;;  %v104_v6 = vld [vmem:[#allocation5 + $0xc0] sm:$0xff]  ;;  %v105_v7 = vld [vmem:[#allocation5 + $0xc8] sm:$0xff] }
  0x17   :  { %113 = vmatpush.msra.mxu0 %v108_v2  ;;  %133 = vmatpush.msra.mxu1 %v109_v3  ;;  %v102_v8 = vld [vmem:[#allocation5 + $0xb0] sm:$0xff]  ;;  %v103_v9 = vld [vmem:[#allocation5 + $0xb8] sm:$0xff]  ;;  %v100_v10 = vld [vmem:[#allocation5 + $0xa0] sm:$0xff] }
  0x18   :  { %v101_v11 = vld [vmem:[#allocation5 + $0xa8] sm:$0xff]  ;;  %v98_v12 = vld [vmem:[#allocation5 + $0x90] sm:$0xff]  ;;  %v99_v13 = vld [vmem:[#allocation5 + $0x98] sm:$0xff] }
  0x19   :  { %114 = vmatpush.msra.mxu0 %v106_v4  ;;  %134 = vmatpush.msra.mxu1 %v107_v5  ;;  %v173_v14 = vld [vmem:[#allocation7 + $0x78] sm:$0xff]  ;;  %v172_v16 = vld [vmem:[#allocation7 + $0x70] sm:$0xff]  ;;  %v96_v17 = vld [vmem:[#allocation5 + $0x80] sm:$0xff] }
  0x1a   :  { %v189_v15 = vld [vmem:[#allocation7 + $0xf8] sm:$0xff]  ;;  %v97_v18 = vld [vmem:[#allocation5 + $0x88] sm:$0xff]  ;;  %190 = vmatpush.msra.mxu2 %v173_v14  ;;  %v188_v19 = vld [vmem:[#allocation7 + $0xf0] sm:$0xff] }
  0x1b   :  { %115 = vmatpush.msra.mxu0 %v104_v6  ;;  %135 = vmatpush.msra.mxu1 %v105_v7  ;;  %v171_v20 = vld [vmem:[#allocation7 + $0x68] sm:$0xff]  ;;  %v94_v22 = vld [vmem:[#allocation5 + $0x70] sm:$0xff]  ;;  %v95_v23 = vld [vmem:[#allocation5 + $0x78] sm:$0xff] }
  0x1c   :  { %210 = vmatpush.msra.mxu3 %v189_v15  ;;  %v187_v21 = vld [vmem:[#allocation7 + $0xe8] sm:$0xff]  ;;  %191 = vmatpush.msra.mxu2 %v172_v16  ;;  %v170_v24 = vld [vmem:[#allocation7 + $0x60] sm:$0xff]  ;;  %v169_v28 = vld [vmem:[#allocation7 + $0x58] sm:$0xff] }
  0x1d   :  { %116 = vmatpush.msra.mxu0 %v102_v8  ;;  %136 = vmatpush.msra.mxu1 %v103_v9  ;;  %v186_v25 = vld [vmem:[#allocation7 + $0xe0] sm:$0xff]  ;;  %v93_v27 = vld [vmem:[#allocation5 + $0x68] sm:$0xff]  ;;  %v185_v29 = vld [vmem:[#allocation7 + $0xd8] sm:$0xff] }
  0x1e   :  { %211 = vmatpush.msra.mxu3 %v188_v19  ;;  %v92_v26 = vld [vmem:[#allocation5 + $0x60] sm:$0xff]  ;;  %192 = vmatpush.msra.mxu2 %v171_v20  ;;  %v90_v30 = vld [vmem:[#allocation5 + $0x50] sm:$0xff]  ;;  %v91_v31 = vld [vmem:[#allocation5 + $0x58] sm:$0xff] }
  0x1f   :  { %117 = vmatpush.msra.mxu0 %v100_v10  ;;  %137 = vmatpush.msra.mxu1 %v101_v11  ;;  %v168_v32 = vld [vmem:[#allocation7 + $0x50] sm:$0xff]  ;;  %v88_v34 = vld [vmem:[#allocation5 + $0x40] sm:$0xff]  ;;  %v89_v35 = vld [vmem:[#allocation5 + $0x48] sm:$0xff] }
  0x20   :  { %212 = vmatpush.msra.mxu3 %v187_v21  ;;  %193 = vmatpush.msra.mxu2 %v170_v24  ;;  %v184_v33 = vld [vmem:[#allocation7 + $0xd0] sm:$0xff]  ;;  %v167_v36 = vld [vmem:[#allocation7 + $0x48] sm:$0xff]  ;;  %v87_v39 = vld [vmem:[#allocation5 + $0x38] sm:$0xff] }
  0x21   :  { %118 = vmatpush.msra.mxu0 %v98_v12  ;;  %138 = vmatpush.msra.mxu1 %v99_v13  ;;  %v183_v37 = vld [vmem:[#allocation7 + $0xc8] sm:$0xff]  ;;  %v86_v38 = vld [vmem:[#allocation5 + $0x30] sm:$0xff]  ;;  %v166_v40 = vld [vmem:[#allocation7 + $0x40] sm:$0xff] }
  0x22   :  { %213 = vmatpush.msra.mxu3 %v186_v25  ;;  %194 = vmatpush.msra.mxu2 %v169_v28  ;;  %v182_v41 = vld [vmem:[#allocation7 + $0xc0] sm:$0xff]  ;;  %v85_v43 = vld [vmem:[#allocation5 + $0x28] sm:$0xff]  ;;  %v165_v44 = vld [vmem:[#allocation7 + $0x38] sm:$0xff] }
  0x23   :  { %119 = vmatpush.msra.mxu0 %v96_v17  ;;  %139 = vmatpush.msra.mxu1 %v97_v18  ;;  %v84_v42 = vld [vmem:[#allocation5 + $0x20] sm:$0xff]  ;;  %v181_v45 = vld [vmem:[#allocation7 + $0xb8] sm:$0xff]  ;;  %v82_v46 = vld [vmem:[#allocation5 + $0x10] sm:$0xff] }
  0x24   :  { %214 = vmatpush.msra.mxu3 %v185_v29  ;;  %195 = vmatpush.msra.mxu2 %v168_v32  ;;  %v83_v47 = vld [vmem:[#allocation5 + $0x18] sm:$0xff]  ;;  %v164_v48 = vld [vmem:[#allocation7 + $0x30] sm:$0xff]  ;;  %v80_v50 = vld [vmem:[#allocation5] sm:$0xff] }
  0x25   :  { %120 = vmatpush.msra.mxu0 %v94_v22  ;;  %140 = vmatpush.msra.mxu1 %v95_v23  ;;  %v180_v49 = vld [vmem:[#allocation7 + $0xb0] sm:$0xff]  ;;  %v81_v51 = vld [vmem:[#allocation5 + $0x8] sm:$0xff]  ;;  %v79_v52 = vld [vmem:[#allocation2] sm:$0xff] }
  0x26   :  { %215 = vmatpush.msra.mxu3 %v184_v33  ;;  %196 = vmatpush.msra.mxu2 %v167_v36  ;;  %v163_v53 = vld [vmem:[#allocation7 + $0x28] sm:$0xff]  ;;  %v162_v55 = vld [vmem:[#allocation7 + $0x20] sm:$0xff]  ;;  %v161_v57 = vld [vmem:[#allocation7 + $0x18] sm:$0xff] }
  0x27   :  { %121 = vmatpush.msra.mxu0 %v92_v26  ;;  %141 = vmatpush.msra.mxu1 %v93_v27  ;;  %v179_v54 = vld [vmem:[#allocation7 + $0xa8] sm:$0xff]  ;;  %v178_v56 = vld [vmem:[#allocation7 + $0xa0] sm:$0xff]  ;;  %v177_v58 = vld [vmem:[#allocation7 + $0x98] sm:$0xff] }
  0x28   :  { %216 = vmatpush.msra.mxu3 %v183_v37  ;;  %197 = vmatpush.msra.mxu2 %v166_v40  ;;  %v160_v59 = vld [vmem:[#allocation7 + $0x10] sm:$0xff]  ;;  %v159_v61 = vld [vmem:[#allocation7 + $0x8] sm:$0xff]  ;;  %v158_v63 = vld [vmem:[#allocation7] sm:$0xff] }
  0x29   :  { %122 = vmatpush.msra.mxu0 %v90_v30  ;;  %142 = vmatpush.msra.mxu1 %v91_v31  ;;  %v176_v60 = vld [vmem:[#allocation7 + $0x90] sm:$0xff]  ;;  %v175_v62 = vld [vmem:[#allocation7 + $0x88] sm:$0xff]  ;;  %v174_v0 = vld [vmem:[#allocation7 + $0x80] sm:$0xff] }
  0x2a   :  { %217 = vmatpush.msra.mxu3 %v182_v41  ;;  %198 = vmatpush.msra.mxu2 %v165_v44  ;;  %v248_v1 = vld [vmem:[#allocation8 + $0x78] sm:$0xff]  ;;  %v247_v2 = vld [vmem:[#allocation8 + $0x70] sm:$0xff]  ;;  %v246_v3 = vld [vmem:[#allocation8 + $0x68] sm:$0xff] }
  0x2b   :  { %123 = vmatpush.msra.mxu0 %v88_v34  ;;  %143 = vmatpush.msra.mxu1 %v89_v35  ;;  %v245_v4 = vld [vmem:[#allocation8 + $0x60] sm:$0xff]  ;;  %v244_v5 = vld [vmem:[#allocation8 + $0x58] sm:$0xff]  ;;  %v243_v6 = vld [vmem:[#allocation8 + $0x50] sm:$0xff] }
  0x2c   :  { %218 = vmatpush.msra.mxu3 %v181_v45  ;;  %199 = vmatpush.msra.mxu2 %v164_v48  ;;  %v242_v7 = vld [vmem:[#allocation8 + $0x48] sm:$0xff]  ;;  %v241_v8 = vld [vmem:[#allocation8 + $0x40] sm:$0xff]  ;;  %v240_v9 = vld [vmem:[#allocation8 + $0x38] sm:$0xff] }
  0x2d   :  { %124 = vmatpush.msra.mxu0 %v86_v38  ;;  %144 = vmatpush.msra.mxu1 %v87_v39  ;;  %v239_v10 = vld [vmem:[#allocation8 + $0x30] sm:$0xff]  ;;  %v238_v11 = vld [vmem:[#allocation8 + $0x28] sm:$0xff]  ;;  %v237_v12 = vld [vmem:[#allocation8 + $0x20] sm:$0xff] }
  0x2e   :  { %219 = vmatpush.msra.mxu3 %v180_v49  ;;  %200 = vmatpush.msra.mxu2 %v163_v53  ;;  %v236_v13 = vld [vmem:[#allocation8 + $0x18] sm:$0xff]  ;;  %v235_v20 = vld [vmem:[#allocation8 + $0x10] sm:$0xff]  ;;  %v234_v21 = vld [vmem:[#allocation8 + $0x8] sm:$0xff] }
  0x2f   :  { %125 = vmatpush.msra.mxu0 %v84_v42  ;;  %145 = vmatpush.msra.mxu1 %v85_v43  ;;  %v233_v22 = vld [vmem:[#allocation8] sm:$0xff] }
  0x30   :  { %220 = vmatpush.msra.mxu3 %v179_v54  ;;  %201 = vmatpush.msra.mxu2 %v162_v55 }
  0x31   :  { %126 = vmatpush.msra.mxu0 %v82_v46  ;;  %146 = vmatpush.msra.mxu1 %v83_v47 }
  0x32   :  { %221 = vmatpush.msra.mxu3 %v178_v56  ;;  %202 = vmatpush.msra.mxu2 %v161_v57 }
  0x33   :  { %127 = vmatpush.msra.mxu0 %v80_v50  ;;  %147 = vmatpush.msra.mxu1 %v81_v51 }
  0x34   :  { %128 = vmatmul.f32.vlgmr.msra.gmra.mxu0 %v79_v52  ;;  %148 = vmatmul.f32.vlgmr.msra.gmra.mxu1 %v79_v52 }
  0x35   :  { %222 = vmatpush.msra.mxu3 %v177_v58  ;;  %203 = vmatpush.msra.mxu2 %v160_v59 }
  0x36   :  { %249 = vmatpush.msrb.mxu0 %v248_v1 }
  0x37   :  { %223 = vmatpush.msra.mxu3 %v176_v60  ;;  %204 = vmatpush.msra.mxu2 %v159_v61 }
  0x38   :  { %250 = vmatpush.msrb.mxu0 %v247_v2 }
  0x39   :  { %224 = vmatpush.msra.mxu3 %v175_v62  ;;  %205 = vmatpush.msra.mxu2 %v158_v63 }
  0x3a   :  { %251 = vmatpush.msrb.mxu0 %v246_v3 }
  0x3b   :  { %225 = vmatpush.msra.mxu3 %v174_v0 }
  0x3c   :  { %252 = vmatpush.msrb.mxu0 %v245_v4 }
  0x3e   :  { %253 = vmatpush.msrb.mxu0 %v244_v5 }
  0x40   :  { %254 = vmatpush.msrb.mxu0 %v243_v6 }
  0x42   :  { %255 = vmatpush.msrb.mxu0 %v242_v7 }
  0x44   :  { %256 = vmatpush.msrb.mxu0 %v241_v8 }
  0x46   :  { %257 = vmatpush.msrb.mxu0 %v240_v9 }
  0x48   :  { %258 = vmatpush.msrb.mxu0 %v239_v10 }
  0x4a   :  { %259 = vmatpush.msrb.mxu0 %v238_v11 }
  0x4c   :  { %260 = vmatpush.msrb.mxu0 %v237_v12 }
  0x4e   :  { %261 = vmatpush.msrb.mxu0 %v236_v13 }
  0x50   :  { %262 = vmatpush.msrb.mxu0 %v235_v20 }
  0x52   :  { %263 = vmatpush.msrb.mxu0 %v234_v21 }
  0x54   :  { %264 = vmatpush.msrb.mxu0 %v233_v22 }
  0xb1   :  { %v129_v14 = vpop.f32.mrf.mxu0  ;;  %v149_v15 = vpop.f32.mrf.mxu1 }
  0xb2   :  { %v154_v16 = vmul.f32 0.1, %v129_v14  ;;  %vm153_vm0 = vcmp.gt.f32.partialorder %v149_v15, 0.0  ;;  %v155_v17 = vmul.f32 0.1, %v149_v15  ;;  %vm152_vm1 = vcmp.gt.f32.partialorder %v129_v14, 0.0 }
  0xb4   :  { %v156_v18 = vsel %vm152_vm1, %v129_v14, %v154_v16  ;;  %v157_v19 = vsel %vm153_vm0, %v149_v15, %v155_v17 }
  0xb5   :  { %206 = vmatmul.f32.vlgmr.msra.gmra.mxu2 %v156_v18  ;;  %226 = vmatmul.f32.vlgmr.msra.gmra.mxu3 %v157_v19 }
 0x138   :  { %v207_v23 = vpop.f32.mrf.mxu2  ;;  %v227_v24 = vpop.f32.mrf.mxu3 }
 0x139   :  { %v228_v25 = vadd.f32 %v227_v24, %v207_v23 }
 0x13b   :  { %v231_v26 = vmul.f32 0.1, %v228_v25  ;;  %vm230_vm2 = vcmp.gt.f32.partialorder %v228_v25, 0.0 }
 0x13d   :  { %v232_v27 = vsel %vm230_vm2, %v228_v25, %v231_v26 }
 0x13e   :  { %265 = vmatmul.f32.vlgmr.msrb.gmra.mxu0 %v232_v27 }
 0x1bb   :  { %v266_v28 = vpop.f32.mrf.mxu0 }
 0x1bc   :  { %269 = vst [vmem:[#allocation10] sm:$0xff] %v266_v28 }
 0x1bd   :  { %280 = dma.vmem_to_hbm [thread:$0]  %s276_s3, 128, %s278_s13, [#allocation4]  }
 0x1be   :  { %424 = dma.done.wait [#allocation4], 128  }
 0x1bf   :  { %425 = vsyncadd [#allocation4], 4294967168 }
 0x1c0   :  { %285 = vsyncpa [#allocation3], 1 }
 0x1c1   :  { %286 = vsyncpa [#allocation6], 1 }
 0x1c2   :  { %287 = vsyncpa [#allocation9], 1 }
 0x1c3   :  { %288 = vsyncpa [#allocation4], 1 }

</bundles_post_ra>
